<compile_context>
chip_gen: v5e
topology: v5e:2x2
jax: 0.10.0
libtpu: 0.0.40
codegen_flags: <defaults>
</compile_context>

<pallas_src>
import jax
import jax.numpy as jnp
from jax.experimental import pallas as pl
from jax.experimental.pallas import tpu as pltpu  # noqa: F401  (TPU backend)

# Logical sizes from the PyTorch module.
BATCH = 4
IN_FEATURES = 3 * 32 * 32      # 3072
HIDDEN = 10
OUT_FEATURES = 4

# Padded sizes used inside the kernel.
HIDDEN_PAD = 16                # bf16 sublane group for the transposed W1
OUT_PAD = 128                  # full lane group -> lane-dense output store


def net_kernel(x_ref, w1t_ref, b1_ref, w2_ref, b2_ref, o_ref):
    # x: (4, 3072) f32 -> bf16 in-kernel (VPU work, hidden under the matmul).
    x = x_ref[...].astype(jnp.bfloat16)
    # First layer: last-dim contraction against the transposed, sublane-padded
    # W1 (16, 3072) bf16.  MXU matmul with f32 accumulation -> (4, 16) f32.
    h = jnp.einsum("bk,hk->bh", x, w1t_ref[...],
                   preferred_element_type=jnp.float32)
    h = jnp.maximum(h + b1_ref[...], 0.0)                 # bias + clamp(min=0)
    # Second (tiny) layer stays f32: (4, 16) @ (16, 128) -> (4, 128).
    y = jnp.dot(h, w2_ref[...], preferred_element_type=jnp.float32)
    o_ref[...] = (y + b2_ref[...]).astype(o_ref.dtype)


def prepare_params(w1, b1, w2, b2):
    """Pad / transpose weights once (device-resident thereafter).

    w1: (3072, 10) -> w1t (16, 3072) bf16, zero rows beyond 10
    b1: (1, 10)    -> (1, 16)    f32, zeros beyond 10
    w2: (10, 4)    -> (16, 128)  f32, zero rows beyond 10, zero cols beyond 4
    b2: (1, 4)     -> (1, 128)   f32, zeros beyond 4
    Zero padding is exact: padded hidden lanes are ReLU(0)=0 and padded W2
    rows/cols are 0, so the valid (4, 4) output block is unchanged.
    """
    w1t = jnp.zeros((HIDDEN_PAD, IN_FEATURES), jnp.float32).at[:HIDDEN, :].set(w1.T)
    b1p = jnp.zeros((1, HIDDEN_PAD), jnp.float32).at[:, :HIDDEN].set(b1)
    w2p = jnp.zeros((HIDDEN_PAD, OUT_PAD), jnp.float32).at[:HIDDEN, :OUT_FEATURES].set(w2)
    b2p = jnp.zeros((1, OUT_PAD), jnp.float32).at[:, :OUT_FEATURES].set(b2)
    return w1t.astype(jnp.bfloat16), b1p, w2p, b2p


def _net_forward(x_nchw, w1t, b1p, w2p, b2p):
    # Same semantics as x.view(4, 3072); no padding or casting in the wrapper.
    x2d = x_nchw.reshape(BATCH, IN_FEATURES)

    # Single grid point; every block equals its full array (legal even when the
    # leading dim < 8) and the whole footprint is < 0.3 MiB of VMEM, so the
    # default scoped-VMEM limit is ample on v5e / v6e / v7x.
    out_pad = pl.pallas_call(
        net_kernel,
        out_shape=jax.ShapeDtypeStruct((BATCH, OUT_PAD), jnp.float32),
        in_specs=[
            pl.BlockSpec((BATCH, IN_FEATURES), lambda: (0, 0)),        # x   (4, 3072) f32
            pl.BlockSpec((HIDDEN_PAD, IN_FEATURES), lambda: (0, 0)),   # W1ᵀ (16, 3072) bf16
            pl.BlockSpec((1, HIDDEN_PAD), lambda: (0, 0)),             # b1  (1, 16)   f32
            pl.BlockSpec((HIDDEN_PAD, OUT_PAD), lambda: (0, 0)),       # W2  (16, 128) f32
            pl.BlockSpec((1, OUT_PAD), lambda: (0, 0)),                # b2  (1, 128)  f32
        ],
        out_specs=pl.BlockSpec((BATCH, OUT_PAD), lambda: (0, 0)),
    )(x2d, w1t, b1p, w2p, b2p)

    # Only a lane-slice remains (callers that can consume the padded (4, 128)
    # output may skip it entirely); the whole wrapper is one jitted dispatch.
    return out_pad[:, :OUT_FEATURES]


net_forward = jax.jit(_net_forward)


def init_params(key):
    # Deterministic init mimicking PyTorch's default U(-1/sqrt(fan_in), +1/sqrt(fan_in)).
    k1, k2, k3, k4 = jax.random.split(key, 4)
    bound1 = 1.0 / (IN_FEATURES ** 0.5)
    bound2 = 1.0 / (HIDDEN ** 0.5)
    w1 = jax.random.uniform(k1, (IN_FEATURES, HIDDEN), jnp.float32, -bound1, bound1)
    b1 = jax.random.uniform(k2, (1, HIDDEN), jnp.float32, -bound1, bound1)
    w2 = jax.random.uniform(k3, (HIDDEN, OUT_FEATURES), jnp.float32, -bound2, bound2)
    b2 = jax.random.uniform(k4, (1, OUT_FEATURES), jnp.float32, -bound2, bound2)
    return w1, b1, w2, b2


if __name__ == "__main__":
    key = jax.random.PRNGKey(0)
    kx, kp = jax.random.split(key)

    # Input consistent with the module: batch=4, 3x32x32 image (NCHW).
    x = jax.random.normal(kx, (BATCH, 3, 32, 32), jnp.float32)
    w1, b1, w2, b2 = init_params(kp)
    w1t, b1p, w2p, b2p = prepare_params(w1, b1, w2, b2)

    out = net_forward(x, w1t, b1p, w2p, b2p)
    out = jax.block_until_ready(out)
    assert out.shape == (BATCH, OUT_FEATURES)

    # Reference 1: identical math (bf16 x/W1, f32 accumulation) in plain JAX.
    x2d = x.reshape(BATCH, IN_FEATURES)
    xb = x2d.astype(jnp.bfloat16).astype(jnp.float32)
    wb = w1.astype(jnp.bfloat16).astype(jnp.float32)
    ref_bf16 = jnp.maximum(xb @ wb + b1, 0.0) @ w2 + b2
    assert jnp.allclose(out, ref_bf16, atol=1e-3, rtol=1e-3), "bf16-math reference mismatch"

    # Reference 2: full-f32 PyTorch-equivalent math (looser tol for bf16 rounding).
    ref_f32 = jnp.maximum(x2d @ w1 + b1, 0.0) @ w2 + b2
    assert jnp.allclose(out, ref_f32, atol=5e-2, rtol=5e-2), "f32 reference mismatch"

    print("KERNEL_OK")
</pallas_src>

<mosaic_0001>
module attributes {stable_mosaic.version = 11 : i64} {
  func.func @net_kernel(%arg0: memref<4x3072xf32, #tpu.memory_space<vmem>>, %arg1: memref<16x3072xbf16, #tpu.memory_space<vmem>>, %arg2: memref<1x16xf32, #tpu.memory_space<vmem>>, %arg3: memref<16x128xf32, #tpu.memory_space<vmem>>, %arg4: memref<1x128xf32, #tpu.memory_space<vmem>>, %arg5: memref<4x128xf32, #tpu.memory_space<vmem>>) attributes {dimension_semantics = [], scalar_prefetch = 0 : i64, scratch_operands = 0 : i64, tpu.core_type = #tpu.core_type<tc>} {
    %c0 = arith.constant 0 : index
    %c0_0 = arith.constant 0 : index
    %0 = vector.load %arg0[%c0, %c0_0] : memref<4x3072xf32, #tpu.memory_space<vmem>>, vector<4x3072xf32>
    %1 = arith.truncf %0 : vector<4x3072xf32> to vector<4x3072xbf16>
    %c0_1 = arith.constant 0 : index
    %c0_2 = arith.constant 0 : index
    %2 = vector.load %arg1[%c0_1, %c0_2] : memref<16x3072xbf16, #tpu.memory_space<vmem>>, vector<16x3072xbf16>
    "tpu.trace_start"() <{level = 10 : i32, message = "bk,hk->bh"}> : () -> ()
    %cst = arith.constant dense<0.000000e+00> : vector<4x16xf32>
    %3 = tpu.matmul %1, %2, %cst {dimension_numbers = #tpu.dot_dimension_numbers<[1], [1], [0], [0], [0, 0, 1, 0], [], []>} : vector<4x3072xbf16>, vector<16x3072xbf16>, vector<4x16xf32> -> vector<4x16xf32>
    "tpu.trace_stop"() : () -> ()
    %c0_3 = arith.constant 0 : index
    %c0_4 = arith.constant 0 : index
    %4 = vector.load %arg2[%c0_3, %c0_4] : memref<1x16xf32, #tpu.memory_space<vmem>>, vector<1x16xf32>
    %5 = vector.broadcast %4 : vector<1x16xf32> to vector<4x16xf32>
    %6 = arith.addf %3, %5 : vector<4x16xf32>
    %cst_5 = arith.constant 0.000000e+00 : f32
    %7 = vector.broadcast %cst_5 : f32 to vector<4x16xf32>
    %8 = arith.maximumf %6, %7 : vector<4x16xf32>
    %c0_6 = arith.constant 0 : index
    %c0_7 = arith.constant 0 : index
    %9 = vector.load %arg3[%c0_6, %c0_7] : memref<16x128xf32, #tpu.memory_space<vmem>>, vector<16x128xf32>
    %cst_8 = arith.constant dense<0.000000e+00> : vector<4x128xf32>
    %10 = tpu.matmul %8, %9, %cst_8 {dimension_numbers = #tpu.dot_dimension_numbers<[1], [0], [0], [1], [0, 0, 1, 1], [], []>} : vector<4x16xf32>, vector<16x128xf32>, vector<4x128xf32> -> vector<4x128xf32>
    %c0_9 = arith.constant 0 : index
    %c0_10 = arith.constant 0 : index
    %11 = vector.load %arg4[%c0_9, %c0_10] : memref<1x128xf32, #tpu.memory_space<vmem>>, vector<1x128xf32>
    %12 = vector.broadcast %11 : vector<1x128xf32> to vector<4x128xf32>
    %13 = arith.addf %10, %12 : vector<4x128xf32>
    %c0_11 = arith.constant 0 : index
    %c0_12 = arith.constant 0 : index
    %14 = vector.load %arg5[%c0_11, %c0_12] : memref<4x128xf32, #tpu.memory_space<vmem>>, vector<4x128xf32>
    tpu.vector_store %arg5[%c0_11, %c0_12], %13 {strides = array<i32>} : memref<4x128xf32, #tpu.memory_space<vmem>>, vector<4x128xf32>,
    return
  }
}

</mosaic_0001>

<bundles_post_ra>
// kernel: _net_forward.1
= control target key start
LH: loop header
LB: loop body
LE: loop exit
PB: predicated region body
PF: predicated region fallthrough
CT: control target
= control target key end

     0   :  { %s1017_s0 = inlined_call_operand.vmem [shape: f32[4,3072], index: 0, kind: input, shape index: {}]   ;;  %s1018_s1 = inlined_call_operand.vmem [shape: bf16[16,3072], index: 1, kind: input, shape index: {}]   ;;  %s1019_s2 = inlined_call_operand.vmem [shape: f32[1,16], index: 2, kind: input, shape index: {}]   ;;  %s1020_s3 = inlined_call_operand.vmem [shape: f32[16,128], index: 3, kind: input, shape index: {}]   ;;  %s1021_s4 = inlined_call_operand.vmem [shape: f32[1,128], index: 4, kind: input, shape index: {}]   ;;  %s1022_s5 = inlined_call_operand.hbm [shape: f32[4,128], index: 5, kind: output, shape index: {}]  }
   0x1   :  { %v643_v0 = vld [vmem:[%s1018_s1] sm:$0xf]  ;;  %v738_v2 = vld [vmem:[%s1018_s1 + $0x4] sm:$0xf]  ;;  %v651_v5 = vld [vmem:[%s1018_s1 + $0x8] sm:$0xf] }
   0x2   :  { %v750_v1 = vld [vmem:[%s1018_s1 + $0x5c] sm:$0xf0]  ;;  %v645_v4 = vld [vmem:[%s1018_s1 + $0x60] sm:$0xf0]  ;;  %v751_v6 = vld [vmem:[%s1018_s1 + $0x64] sm:$0xf0] }
   0x3   :  { %v644_v3 = vor.u32 %v750_v1, %v643_v0  ;;  %v648_v7 = vor.u32 %v738_v2, %v645_v4  ;;  %v652_v8 = vor.u32 %v751_v6, %v651_v5  ;;  %v739_v9 = vld [vmem:[%s1018_s1 + $0xc] sm:$0xf]  ;;  %v22_v11 = vld [vmem:[%s1017_s0] sm:$0xff]  ;;  %v667_v14 = vld [vmem:[%s1018_s1 + $0x18] sm:$0xf] }
   0x4   :  { %v653_v10 = vld [vmem:[%s1018_s1 + $0x68] sm:$0xf0]  ;;  %46 = vst [vmem:[#allocation1] ss:$2 sm:$0xff] %v22_v11  ;;  %v753_v15 = vld [vmem:[%s1018_s1 + $0x74] sm:$0xf0] }
   0x5   :  { %288 = vmatpush.bf16.xpose.msra.mxu0 %v644_v3  ;;  %v656_v12 = vor.u32 %v739_v9, %v653_v10  ;;  %v23_v13 = vld [vmem:[%s1017_s0 + $0x8] sm:$0xff]  ;;  %301 = vmatpush.bf16.xpose.msra.mxu1 %v648_v7  ;;  %v668_v16 = vor.u32 %v753_v15, %v667_v14  ;;  %v659_v17 = vld [vmem:[%s1018_s1 + $0x10] sm:$0xf]  ;;  %v741_v19 = vld [vmem:[%s1018_s1 + $0x1c] sm:$0xf] }
   0x6   :  { %314 = vmatpush.bf16.xpose.msra.mxu2 %v652_v8  ;;  %48 = vst [vmem:[#allocation1 + $0x10] ss:$2 sm:$0xff] %v23_v13  ;;  %v752_v18 = vld [vmem:[%s1018_s1 + $0x6c] sm:$0xf0]  ;;  %v669_v21 = vld [vmem:[%s1018_s1 + $0x78] sm:$0xf0] }
   0x7   :  { %327 = vmatpush.bf16.xpose.msra.mxu3 %v656_v12  ;;  %v660_v20 = vor.u32 %v752_v18, %v659_v17  ;;  %v740_v22 = vld [vmem:[%s1018_s1 + $0x14] sm:$0xf]  ;;  %v672_v24 = vor.u32 %v741_v19, %v669_v21  ;;  %v25_v27 = vld [vmem:[%s1017_s0 + $0x18] sm:$0xff]  ;;  %v26_v28 = vld [vmem:[%s1017_s0 + $0x20] sm:$0xff] }
   0x8   :  { %v661_v23 = vld [vmem:[%s1018_s1 + $0x70] sm:$0xf0]  ;;  %v27_v29 = vld [vmem:[%s1017_s0 + $0x28] sm:$0xff]  ;;  %52 = vst [vmem:[#allocation1 + $0x30] ss:$2 sm:$0xff] %v25_v27  ;;  %v29_v47 = vld [vmem:[%s1017_s0 + $0x38] sm:$0xff] }
   0x9   :  { %v664_v25 = vor.u32 %v740_v22, %v661_v23  ;;  %v24_v26 = vld [vmem:[%s1017_s0 + $0x10] sm:$0xff]  ;;  %v683_v30 = vld [vmem:[%s1018_s1 + $0x28] sm:$0xf]  ;;  %v675_v32 = vld [vmem:[%s1018_s1 + $0x20] sm:$0xf] }
   0xa   :  { %50 = vst [vmem:[#allocation1 + $0x20] ss:$2 sm:$0xff] %v24_v26  ;;  %v755_v31 = vld [vmem:[%s1018_s1 + $0x84] sm:$0xf0]  ;;  %v28_v41 = vld [vmem:[%s1017_s0 + $0x30] sm:$0xff]  ;;  %v30_v54 = vld [vmem:[%s1017_s0 + $0x40] sm:$0xff] }
   0xb   :  { %v53_v33 = vld.sshfl [vmem:[#allocation1] sm:$0xff pattern:$0x75316420]  ;;  %v54_v34 = vld.sshfl [vmem:[#allocation1 + $0x8] sm:$0xff pattern:$0x75316420]  ;;  %v684_v38 = vor.u32 %v755_v31, %v683_v30 }
   0xc   :  { %v109_v35 = vpack.c.bf16 %v53_v33, %v53_v33  ;;  %61 = vst [vmem:[#allocation1] ss:$2 sm:$0xff] %v26_v28  ;;  %v110_v36 = vpack.c.bf16 %v54_v34, %v54_v34  ;;  %v754_v42 = vld [vmem:[%s1018_s1 + $0x7c] sm:$0xf0]  ;;  %v743_v45 = vld [vmem:[%s1018_s1 + $0x2c] sm:$0xf] }
   0xd   :  { %340 = vmatpush.bf16.xpose.msrb.mxu0 %v660_v20  ;;  %353 = vmatpush.bf16.xpose.msrb.mxu1 %v664_v25  ;;  %v55_v37 = vld.sshfl [vmem:[#allocation1 + $0x10] sm:$0xff pattern:$0x75316420]  ;;  %v56_v40 = vld.sshfl [vmem:[#allocation1 + $0x18] sm:$0xff pattern:$0x75316420]  ;;  %v676_v44 = vor.u32 %v754_v42, %v675_v32 }
   0xe   :  { %366 = vmatpush.bf16.xpose.msrb.mxu2 %v668_v16  ;;  %v111_v39 = vpack.c.bf16 %v55_v37, %v55_v37  ;;  %289 = vmatmul.bf16.vlgmr.msra.gmra.mxu0 %v109_v35  ;;  %62 = vst [vmem:[#allocation1 + $0x10] ss:$2 sm:$0xff] %v27_v29  ;;  %v112_v43 = vpack.c.bf16 %v56_v40, %v56_v40  ;;  %v685_v46 = vld [vmem:[%s1018_s1 + $0x88] sm:$0xf0]  ;;  %v742_v49 = vld [vmem:[%s1018_s1 + $0x24] sm:$0xf] }
   0xf   :  { %379 = vmatpush.bf16.xpose.msrb.mxu3 %v672_v24  ;;  %302 = vmatmul.bf16.vlgmr.msra.gmra.mxu1 %v110_v36  ;;  %v688_v48 = vor.u32 %v743_v45, %v685_v46  ;;  %v677_v50 = vld [vmem:[%s1018_s1 + $0x80] sm:$0xf0]  ;;  %v59_v55 = vld.sshfl [vmem:[#allocation1 + $0x30] sm:$0xff pattern:$0x75316420]  ;;  %v31_v57 = vld [vmem:[%s1017_s0 + $0x48] sm:$0xff] }
  0x10   :  { %315 = vmatmul.bf16.vlgmr.msra.gmra.mxu2 %v111_v39  ;;  %328 = vmatmul.bf16.vlgmr.msra.gmra.mxu3 %v112_v43  ;;  %v680_v53 = vor.u32 %v742_v49, %v677_v50  ;;  %v60_v56 = vld.sshfl [vmem:[#allocation1 + $0x38] sm:$0xff pattern:$0x75316420]  ;;  %v691_v0 = vld [vmem:[%s1018_s1 + $0x30] sm:$0xf] }
  0x11   :  { %v57_v51 = vld.sshfl [vmem:[#allocation1 + $0x20] sm:$0xff pattern:$0x75316420]  ;;  %v58_v52 = vld.sshfl [vmem:[#allocation1 + $0x28] sm:$0xff pattern:$0x75316420] }
  0x12   :  { %63 = vst [vmem:[#allocation1 + $0x20] ss:$2 sm:$0xff] %v28_v41  ;;  %v699_v62 = vld [vmem:[%s1018_s1 + $0x38] sm:$0xf]  ;;  %v756_v1 = vld [vmem:[%s1018_s1 + $0x8c] sm:$0xf0]  ;;  %v113_v5 = vpack.c.bf16 %v57_v51, %v57_v51  ;;  %v114_v6 = vpack.c.bf16 %v58_v52, %v58_v52 }
  0x13   :  { %64 = vst [vmem:[#allocation1 + $0x30] ss:$2 sm:$0xff] %v29_v47  ;;  %v65_v58 = vld.sshfl [vmem:[#allocation1] sm:$0xff pattern:$0x75316420] }
  0x14   :  { %v66_v59 = vld.sshfl [vmem:[#allocation1 + $0x8] sm:$0xff pattern:$0x75316420]  ;;  %v757_v63 = vld [vmem:[%s1018_s1 + $0x94] sm:$0xf0] }
  0x15   :  { %392 = vmatpush.bf16.xpose.msra.mxu0 %v676_v44  ;;  %405 = vmatpush.bf16.xpose.msra.mxu1 %v680_v53  ;;  %73 = vst [vmem:[#allocation1] ss:$2 sm:$0xff] %v30_v54  ;;  %v67_v60 = vld.sshfl [vmem:[#allocation1 + $0x10] sm:$0xff pattern:$0x75316420] }
  0x16   :  { %418 = vmatpush.bf16.xpose.msra.mxu2 %v684_v38  ;;  %v68_v61 = vld.sshfl [vmem:[#allocation1 + $0x18] sm:$0xff pattern:$0x75316420]  ;;  %v744_v4 = vld [vmem:[%s1018_s1 + $0x34] sm:$0xf] }
  0x17   :  { %431 = vmatpush.bf16.xpose.msra.mxu3 %v688_v48  ;;  %74 = vst [vmem:[#allocation1 + $0x10] ss:$2 sm:$0xff] %v31_v57  ;;  %v745_v2 = vld [vmem:[%s1018_s1 + $0x3c] sm:$0xf]  ;;  %v693_v7 = vld [vmem:[%s1018_s1 + $0x90] sm:$0xf0] }
  0x18   :  { %v701_v3 = vld [vmem:[%s1018_s1 + $0x98] sm:$0xf0] }
  0x19   :  { %10 = vsyncpa [#allocation3], 0  ;;  %v115_v8 = vpack.c.bf16 %v59_v55, %v59_v55  ;;  %v692_v9 = vor.u32 %v756_v1, %v691_v0  ;;  %v116_v10 = vpack.c.bf16 %v60_v56, %v60_v56  ;;  %v700_v11 = vor.u32 %v757_v63, %v699_v62  ;;  %v69_v14 = vld.sshfl [vmem:[#allocation1 + $0x20] sm:$0xff pattern:$0x75316420]  ;;  %v32_v16 = vld [vmem:[%s1017_s0 + $0x50] sm:$0xff] }
  0x1a   :  { %v704_v12 = vor.u32 %v745_v2, %v701_v3  ;;  %v696_v13 = vor.u32 %v744_v4, %v693_v7  ;;  %v70_v15 = vld.sshfl [vmem:[#allocation1 + $0x28] sm:$0xff pattern:$0x75316420]  ;;  %v71_v17 = vld.sshfl [vmem:[#allocation1 + $0x30] sm:$0xff pattern:$0x75316420]  ;;  %v117_v25 = vpack.c.bf16 %v65_v58, %v65_v58  ;;  %v118_v26 = vpack.c.bf16 %v66_v59, %v66_v59 }
  0x1b   :  { %75 = vst [vmem:[#allocation1 + $0x20] ss:$2 sm:$0xff] %v32_v16  ;;  %v33_v18 = vld [vmem:[%s1017_s0 + $0x58] sm:$0xff]  ;;  %v707_v20 = vld [vmem:[%s1018_s1 + $0x40] sm:$0xf]  ;;  %v119_v30 = vpack.c.bf16 %v67_v60, %v67_v60  ;;  %v120_v32 = vpack.c.bf16 %v68_v61, %v68_v61  ;;  %v121_v41 = vpack.c.bf16 %v69_v14, %v69_v14  ;;  %v122_v42 = vpack.c.bf16 %v70_v15, %v70_v15  ;;  %s791_s16 = smov [#allocation2]  }
  0x1c   :  { %v72_v19 = vld.sshfl [vmem:[#allocation1 + $0x38] sm:$0xff pattern:$0x75316420]  ;;  %v758_v21 = vld [vmem:[%s1018_s1 + $0x9c] sm:$0xf0]  ;;  %v123_v46 = vpack.c.bf16 %v71_v17, %v71_v17  ;;  %vm600_vm0 = vcmask 130048  }
  0x1d   :  { %76 = vst [vmem:[#allocation1 + $0x30] ss:$2 sm:$0xff] %v33_v18  ;;  %v715_v22 = vld [vmem:[%s1018_s1 + $0x48] sm:$0xf]  ;;  %v747_v24 = vld [vmem:[%s1018_s1 + $0x4c] sm:$0xf]  ;;  %v708_v31 = vor.u32 %v758_v21, %v707_v20  ;;  %v124_v48 = vpack.c.bf16 %v72_v19, %v72_v19 }
  0x1e   :  { %341 = vmatmul.bf16.vlgmr.msrb.gmra.mxu0 %v113_v5  ;;  %v759_v23 = vld [vmem:[%s1018_s1 + $0xa4] sm:$0xf0]  ;;  %v717_v27 = vld [vmem:[%s1018_s1 + $0xa8] sm:$0xf0]  ;;  %v746_v28 = vld [vmem:[%s1018_s1 + $0x44] sm:$0xf] }
  0x1f   :  { %354 = vmatmul.bf16.vlgmr.msrb.gmra.mxu1 %v114_v6  ;;  %444 = vmatpush.bf16.xpose.msrb.mxu0 %v692_v9  ;;  %v709_v29 = vld [vmem:[%s1018_s1 + $0xa0] sm:$0xf0]  ;;  %v716_v33 = vor.u32 %v759_v23, %v715_v22  ;;  %v720_v34 = vor.u32 %v747_v24, %v717_v27  ;;  %v723_v36 = vld [vmem:[%s1018_s1 + $0x50] sm:$0xf]  ;;  %v731_v38 = vld [vmem:[%s1018_s1 + $0x58] sm:$0xf] }
  0x20   :  { %367 = vmatmul.bf16.vlgmr.msrb.gmra.mxu2 %v115_v8  ;;  %380 = vmatmul.bf16.vlgmr.msrb.gmra.mxu3 %v116_v10  ;;  %v712_v35 = vor.u32 %v746_v28, %v709_v29  ;;  %v760_v37 = vld [vmem:[%s1018_s1 + $0xac] sm:$0xf0]  ;;  %v761_v39 = vld [vmem:[%s1018_s1 + $0xb4] sm:$0xf0]  ;;  %v749_v40 = vld [vmem:[%s1018_s1 + $0x5c] sm:$0xf] }
  0x21   :  { %470 = vmatpush.bf16.xpose.msrb.mxu2 %v700_v11  ;;  %483 = vmatpush.bf16.xpose.msrb.mxu3 %v704_v12  ;;  %v733_v43 = vld [vmem:[%s1018_s1 + $0xb8] sm:$0xf0]  ;;  %v748_v44 = vld [vmem:[%s1018_s1 + $0x54] sm:$0xf]  ;;  %v724_v47 = vor.u32 %v760_v37, %v723_v36  ;;  %v732_v49 = vor.u32 %v761_v39, %v731_v38  ;;  %v763_v11 = vld [vmem:[%s1019_s2] ss:$0 sm:$0xff] }
  0x22   :  { %457 = vmatpush.bf16.xpose.msrb.mxu1 %v696_v13  ;;  %v725_v45 = vld [vmem:[%s1018_s1 + $0xb0] sm:$0xf0]  ;;  %v736_v50 = vor.u32 %v749_v40, %v733_v43  ;;  %v77_v52 = vld.sshfl [vmem:[#allocation1] sm:$0xff pattern:$0x75316420]  ;;  %s630_s17 = sshll.u32 %s791_s16, 4  ;;  %s631_s17 = int_to_ptr.vmem [resolvable:$true] %s630_s17 }
  0x23   :  { %v728_v51 = vor.u32 %v748_v44, %v725_v45  ;;  %v78_v53 = vld.sshfl [vmem:[#allocation1 + $0x8] sm:$0xff pattern:$0x75316420]  ;;  %v79_v54 = vld.sshfl [vmem:[#allocation1 + $0x10] sm:$0xff pattern:$0x75316420]  ;;  %v125_v56 = vpack.c.bf16 %v77_v52, %v77_v52 }
  0x24   :  { %v80_v55 = vld.sshfl [vmem:[#allocation1 + $0x18] sm:$0xff pattern:$0x75316420]  ;;  %v126_v57 = vpack.c.bf16 %v78_v53, %v78_v53  ;;  %v127_v58 = vpack.c.bf16 %v79_v54, %v79_v54  ;;  %v81_v60 = vld.sshfl [vmem:[#allocation1 + $0x20] sm:$0xff pattern:$0x75316420] }
  0x25   :  { %v128_v59 = vpack.c.bf16 %v80_v55, %v80_v55  ;;  %v82_v61 = vld.sshfl [vmem:[#allocation1 + $0x28] sm:$0xff pattern:$0x75316420]  ;;  %v83_v62 = vld.sshfl [vmem:[#allocation1 + $0x30] sm:$0xff pattern:$0x75316420]  ;;  %v129_v0 = vpack.c.bf16 %v81_v60, %v81_v60 }
  0x26   :  { %v84_v63 = vld.sshfl [vmem:[#allocation1 + $0x38] sm:$0xff pattern:$0x75316420]  ;;  %v130_v1 = vpack.c.bf16 %v82_v61, %v82_v61  ;;  %v131_v2 = vpack.c.bf16 %v83_v62, %v83_v62  ;;  %s632_s20 = sshll.u32 %s1022_s5, 4  ;;  %s633_s20 = int_to_ptr.hbm [resolvable:$true] %s632_s20 }
  0x27   :  { %v132_v3 = vpack.c.bf16 %v84_v63, %v84_v63 }
  0x2e   :  { %393 = vmatmul.bf16.vlgmr.msra.gmra.mxu0 %v117_v25 }
  0x2f   :  { %406 = vmatmul.bf16.vlgmr.msra.gmra.mxu1 %v118_v26  ;;  %496 = vmatpush.bf16.xpose.msra.mxu0 %v708_v31 }
  0x30   :  { %419 = vmatmul.bf16.vlgmr.msra.gmra.mxu2 %v119_v30  ;;  %432 = vmatmul.bf16.vlgmr.msra.gmra.mxu3 %v120_v32 }
  0x31   :  { %522 = vmatpush.bf16.xpose.msra.mxu2 %v716_v33  ;;  %535 = vmatpush.bf16.xpose.msra.mxu3 %v720_v34  ;;  %v595_v34 = vld [vmem:[%s1020_s3 + $0x8] sm:$0xff] }
  0x32   :  { %509 = vmatpush.bf16.xpose.msra.mxu1 %v712_v35 }
  0x3e   :  { %445 = vmatmul.bf16.vlgmr.msrb.gmra.mxu0 %v121_v41 }
  0x3f   :  { %458 = vmatmul.bf16.vlgmr.msrb.gmra.mxu1 %v122_v42  ;;  %548 = vmatpush.bf16.xpose.msrb.mxu0 %v724_v47  ;;  %v594_v42 = vld [vmem:[%s1020_s3] sm:$0xff] }
  0x40   :  { %471 = vmatmul.bf16.vlgmr.msrb.gmra.mxu2 %v123_v46  ;;  %484 = vmatmul.bf16.vlgmr.msrb.gmra.mxu3 %v124_v48 }
  0x41   :  { %574 = vmatpush.bf16.xpose.msrb.mxu2 %v732_v49  ;;  %587 = vmatpush.bf16.xpose.msrb.mxu3 %v736_v50 }
  0x42   :  { %561 = vmatpush.bf16.xpose.msrb.mxu1 %v728_v51 }
  0x4e   :  { %497 = vmatmul.bf16.vlgmr.msra.gmra.mxu0 %v125_v56 }
  0x4f   :  { %510 = vmatmul.bf16.vlgmr.msra.gmra.mxu1 %v126_v57  ;;  %618 = vmatpush.msra.mxu0 %v595_v34 }
  0x50   :  { %523 = vmatmul.bf16.vlgmr.msra.gmra.mxu2 %v127_v58  ;;  %536 = vmatmul.bf16.vlgmr.msra.gmra.mxu3 %v128_v59 }
  0x51   :  { %619 = vmatpush.msra.mxu0 %v594_v42 }
  0x5e   :  { %549 = vmatmul.bf16.vlgmr.msrb.gmra.mxu0 %v129_v0 }
  0x5f   :  { %562 = vmatmul.bf16.vlgmr.msrb.gmra.mxu1 %v130_v1 }
  0x60   :  { %575 = vmatmul.bf16.vlgmr.msrb.gmra.mxu2 %v131_v2  ;;  %588 = vmatmul.bf16.vlgmr.msrb.gmra.mxu3 %v132_v3 }
  0x8b   :  { %v290_v4 = vpop.f32.mrf.mxu0 }
  0x8c   :  { %v303_v5 = vpop.f32.mrf.mxu1  ;;  %v291_v15 = vadd.f32 %v763_v11, %v290_v4 }
  0x8e   :  { %v304_v17 = vadd.f32 %v303_v5, %v291_v15 }
  0x93   :  { %v316_v6 = vpop.f32.mrf.mxu2  ;;  %v329_v7 = vpop.f32.mrf.mxu3 }
  0x94   :  { %v292_v8 = vpop.f32.mrf.mxu0  ;;  %v305_v9 = vpop.f32.mrf.mxu1  ;;  %v317_v21 = vadd.f32 %v316_v6, %v304_v17 }
  0x96   :  { %v330_v23 = vadd.f32 %v329_v7, %v317_v21 }
  0x9b   :  { %v318_v10 = vpop.f32.mrf.mxu2  ;;  %v331_v12 = vpop.f32.mrf.mxu3 }
  0x9c   :  { %v342_v13 = vpop.f32.mrf.mxu0  ;;  %v355_v14 = vpop.f32.mrf.mxu1 }
  0x9d   :  { %v343_v27 = vadd.f32 %v342_v13, %v330_v23 }
  0x9f   :  { %v356_v28 = vadd.f32 %v355_v14, %v343_v27 }
  0xa3   :  { %v368_v16 = vpop.f32.mrf.mxu2  ;;  %v381_v18 = vpop.f32.mrf.mxu3 }
  0xa4   :  { %v344_v19 = vpop.f32.mrf.mxu0  ;;  %v357_v20 = vpop.f32.mrf.mxu1  ;;  %v369_v30 = vadd.f32 %v368_v16, %v356_v28  ;;  %v764_v16 = vld [vmem:[%s1021_s4] ss:$0 sm:$0xff] }
  0xa6   :  { %v382_v35 = vadd.f32 %v381_v18, %v369_v30 }
  0xab   :  { %v370_v22 = vpop.f32.mrf.mxu2  ;;  %v383_v24 = vpop.f32.mrf.mxu3 }
  0xac   :  { %v394_v25 = vpop.f32.mrf.mxu0  ;;  %v407_v26 = vpop.f32.mrf.mxu1 }
  0xad   :  { %v395_v36 = vadd.f32 %v394_v25, %v382_v35 }
  0xaf   :  { %v408_v41 = vadd.f32 %v407_v26, %v395_v36 }
  0xb3   :  { %v420_v29 = vpop.f32.mrf.mxu2  ;;  %v433_v31 = vpop.f32.mrf.mxu3 }
  0xb4   :  { %v396_v32 = vpop.f32.mrf.mxu0  ;;  %v409_v33 = vpop.f32.mrf.mxu1  ;;  %v421_v43 = vadd.f32 %v420_v29, %v408_v41 }
  0xb6   :  { %v434_v45 = vadd.f32 %v433_v31, %v421_v43 }
  0xbb   :  { %v422_v37 = vpop.f32.mrf.mxu2  ;;  %v435_v38 = vpop.f32.mrf.mxu3 }
  0xbc   :  { %v446_v39 = vpop.f32.mrf.mxu0  ;;  %v459_v40 = vpop.f32.mrf.mxu1 }
  0xbd   :  { %v447_v49 = vadd.f32 %v446_v39, %v434_v45 }
  0xbf   :  { %v460_v50 = vadd.f32 %v459_v40, %v447_v49 }
  0xc3   :  { %v472_v44 = vpop.f32.mrf.mxu2  ;;  %v485_v46 = vpop.f32.mrf.mxu3 }
  0xc4   :  { %v448_v47 = vpop.f32.mrf.mxu0  ;;  %v461_v48 = vpop.f32.mrf.mxu1  ;;  %v473_v52 = vadd.f32 %v472_v44, %v460_v50 }
  0xc6   :  { %v486_v56 = vadd.f32 %v485_v46, %v473_v52 }
  0xcb   :  { %v474_v51 = vpop.f32.mrf.mxu2  ;;  %v487_v53 = vpop.f32.mrf.mxu3 }
  0xcc   :  { %v498_v54 = vpop.f32.mrf.mxu0  ;;  %v511_v55 = vpop.f32.mrf.mxu1 }
  0xcd   :  { %v499_v57 = vadd.f32 %v498_v54, %v486_v56 }
  0xcf   :  { %v512_v62 = vadd.f32 %v511_v55, %v499_v57 }
  0xd3   :  { %v524_v58 = vpop.f32.mrf.mxu2  ;;  %v537_v59 = vpop.f32.mrf.mxu3 }
  0xd4   :  { %v500_v60 = vpop.f32.mrf.mxu0  ;;  %v513_v61 = vpop.f32.mrf.mxu1  ;;  %v525_v63 = vadd.f32 %v524_v58, %v512_v62 }
  0xd6   :  { %v538_v1 = vadd.f32 %v537_v59, %v525_v63 }
  0xdb   :  { %v526_v0 = vpop.f32.mrf.mxu2  ;;  %v539_v2 = vpop.f32.mrf.mxu3 }
  0xdc   :  { %v550_v3 = vpop.f32.mrf.mxu0  ;;  %v563_v4 = vpop.f32.mrf.mxu1 }
  0xdd   :  { %v551_v5 = vadd.f32 %v550_v3, %v538_v1 }
  0xdf   :  { %v564_v6 = vadd.f32 %v563_v4, %v551_v5 }
  0xe3   :  { %v576_v7 = vpop.f32.mrf.mxu2  ;;  %v589_v9 = vpop.f32.mrf.mxu3 }
  0xe4   :  { %v577_v8 = vadd.f32 %v576_v7, %v564_v6  ;;  %v552_v10 = vpop.f32.mrf.mxu0  ;;  %v565_v11 = vpop.f32.mrf.mxu1 }
  0xe6   :  { %v590_v12 = vadd.f32 %v589_v9, %v577_v8 }
  0xe8   :  { %v593_v13 = vmax.f32 %v590_v12, 0.0 }
  0xea   :  { %737 = vmatmul.msk.f32.vlgmr.msra.gmra.mxu0 %vm600_vm0, %v593_v13 }
  0xeb   :  { %v578_v14 = vpop.f32.mrf.mxu2  ;;  %v591_v15 = vpop.f32.mrf.mxu3 }
 0x167   :  { %v621_v17 = vpop.f32.mrf.mxu0 }
 0x168   :  { %v622_v18 = vadd.f32 %v764_v16, %v621_v17 }
 0x16a   :  { %624 = vst [vmem:[#allocation2] sm:$0xf] %v622_v18 }
 0x16b   :  { %635 = dma.vmem_to_hbm [thread:$0]  %s631_s17, 64, %s633_s20, [#allocation3]  }
 0x16c   :  { %789 = dma.done.wait [#allocation3], 64  }
 0x16d   :  { %790 = vsyncadd [#allocation3], 4294967232 }
 0x16e   :  { %640 = vsyncpa [#allocation3], 1 }

</bundles_post_ra>
